<compile_context>
chip_gen: v7x
topology: tpu7x:2x2x1
jax: 0.10.0
libtpu: 0.0.40
codegen_flags: <defaults>
</compile_context>

<pallas_src>
import math

import jax
import jax.numpy as jnp
from jax.experimental import pallas as pl
from jax.experimental.pallas import tpu as pltpu


def _round_up(x, m):
    return ((x + m - 1) // m) * m


def _pick_row_tile(R, P, lane_budget):
    """Largest divisor of R with TR*P <= lane_budget, preferring >=2 grid steps."""
    divisors = [t for t in range(1, R + 1) if R % t == 0]
    fitting = [t for t in divisors if t * P <= lane_budget]
    if not fitting:
        # TODO(synk): for very long T, chunk the time axis (second grid dim)
        # instead of letting a single row segment exceed the lane budget.
        return 1
    tr = max(fitting)
    if tr == R and R > 1:
        # Prefer >=2 grid steps so both TensorCores get work on v7x; the extra
        # step is ~0.35us of loop overhead on single-TC chips (v5e/v6e).
        multi = [t for t in fitting if t < R]
        if multi:
            tr = max(multi)
    return tr


# ---------------------------------------------------------------------------
# Fused TemporalConvNet-stack kernel (all layers, one call, one row tile/step).
# Flat layout: row r of the tile owns lanes [r*P, (r+1)*P); layer l's valid
# data sits at within-row positions [a_l, a_l + L_l) (static, precomputed).
# ---------------------------------------------------------------------------
def _make_stack_kernel(*, TR, P, K, OFF, L0, C0, layers, n_w):
    FLAT = TR * P
    half = (K - 1) // 2

    def kernel(*refs):
        pos_ref, x_ref = refs[0], refs[1]
        w_refs = refs[2:2 + n_w]
        o_ref = refs[2 + n_w]
        xf = refs[3 + n_w]                       # (C0, FLAT) VMEM scratch

        pos = pos_ref[...]                       # (1, FLAT) int32: lane pos mod P

        # ---- gather the (TR, C0, L0) input block into the flat layout ------
        xf[...] = jnp.zeros_like(xf)
        for r in range(TR):
            lo = r * P + OFF
            xf[:, lo:lo + L0] = x_ref[r]
        x = xf[...]

        # ---- helpers --------------------------------------------------------
        def masked(y, lo, hi):
            """Zero every column whose within-row position is outside [lo, hi)."""
            p = jnp.broadcast_to(pos, y.shape)
            keep = jnp.logical_and(p >= lo, p < hi)
            return jnp.where(keep, y, jnp.zeros_like(y))

        def shifted(v, off):
            """t[:, j] = v[:, j + off], zero-filled at the flat boundary."""
            if off == 0:
                return v
            z = jnp.zeros((v.shape[0], abs(off)), v.dtype)
            if off > 0:
                return jnp.concatenate([v[:, off:], z], axis=-1)
            return jnp.concatenate([z, v[:, :FLAT + off]], axis=-1)

        def conv_relu(v, w_ref, b_ref, d):
            """Dilated conv (symmetric tap frame) + bias + ReLU over FLAT lanes."""
            acc = jnp.dot(w_ref[half], v, preferred_element_type=jnp.float32)
            for k in range(K):
                if k == half:
                    continue
                acc = acc + jnp.dot(w_ref[k], shifted(v, (k - half) * d),
                                    preferred_element_type=jnp.float32)
            acc = acc + jnp.broadcast_to(b_ref[...], acc.shape)
            return jnp.maximum(acc, 0.0)

        # ---- the layer stack (fully unrolled; activations stay on-core) -----
        wi = 0
        for lyr in layers:
            d, a, L = lyr["d"], lyr["a"], lyr["L"]
            c = half * d                          # per-conv growth on each side
            w1, b1, w2, b2 = w_refs[wi:wi + 4]
            wi += 4

            y1 = masked(conv_relu(x, w1, b1, d), a - c, a + L + c)
            y2 = conv_relu(y1, w2, b2, d)

            if lyr["down"]:                        # 1x1 channel downsample
                wd, bd = w_refs[wi:wi + 2]
                wi += 2
                res = jnp.dot(wd[...], x, preferred_element_type=jnp.float32)
                res = res + jnp.broadcast_to(bd[...], res.shape)
                res = masked(res, a, a + L)
            else:                                  # identity (C_in == C_out)
                res = x

            x = masked(jnp.maximum(y2 + res, 0.0), a - 2 * c, a + L + 2 * c)

        o_ref[...] = x.astype(o_ref.dtype)         # lane-dense (C_last, FLAT) store

    return kernel


def tcn_stack_pallas(x, params, kernel_size, *, lane_budget=None):
    """Fused TemporalConvNet forward.  x: (rows, C_in, T) f32 -> (rows, C_last, T_out)."""
    R, C0, L0 = x.shape
    K = kernel_size
    assert K % 2 == 1, "reconstruction assumes an odd temporal kernel"
    n_layers = len(params)
    dils = [2 ** i for i in range(n_layers)]
    halves = [((K - 1) // 2) * d for d in dils]

    # Margin M so every layer's taps stay inside its own 128-aligned row segment.
    M, pref = 0, 0
    for c in halves:
        M = max(M, 2 * pref + 3 * c)
        pref += c
    OFF = M
    P = max(128, _round_up(L0 + 2 * M, 128))       # 128-aligned row segment

    # Static per-layer frames (offset a, valid length L) inside a row segment.
    layer_cfg, a, L, c_in = [], OFF, L0, C0
    for p, d, c in zip(params, dils, halves):
        c_out = p["w1"].shape[1]
        layer_cfg.append(dict(d=d, c_in=c_in, c_out=c_out,
                              down=p["wd"] is not None, a=a, L=L))
        a, L, c_in = a - 2 * c, L + 4 * c, c_out
    a_fin, L_fin, C_last = a, L, c_in

    C_max = max([C0] + [l["c_out"] for l in layer_cfg])
    if lane_budget is None:
        # Keep the live (C, FLAT) values comfortably inside the 64-vreg file.
        lane_budget = max(P, min(2048, (40 * 8 * 128) // ((K + 3) * C_max)))
    TR = _pick_row_tile(R, P, lane_budget)
    FLAT = TR * P

    # Per-row lane positions, precomputed (no in-kernel iota/mod lowering).
    pos = jnp.tile(jnp.arange(P, dtype=jnp.int32), TR).reshape(1, FLAT)

    args = [pos, x]
    in_specs = [pl.BlockSpec((1, FLAT), lambda i: (0, 0)),
                pl.BlockSpec((TR, C0, L0), lambda i: (i, 0, 0))]
    for p, lyr in zip(params, layer_cfg):
        ci, co = lyr["c_in"], lyr["c_out"]
        args += [p["w1"], p["b1"], p["w2"], p["b2"]]
        in_specs += [pl.BlockSpec((K, co, ci), lambda i: (0, 0, 0)),
                     pl.BlockSpec((co, 1), lambda i: (0, 0)),
                     pl.BlockSpec((K, co, co), lambda i: (0, 0, 0)),
                     pl.BlockSpec((co, 1), lambda i: (0, 0))]
        if lyr["down"]:
            args += [p["wd"], p["bd"]]
            in_specs += [pl.BlockSpec((co, ci), lambda i: (0, 0)),
                         pl.BlockSpec((co, 1), lambda i: (0, 0))]

    kernel = _make_stack_kernel(TR=TR, P=P, K=K, OFF=OFF, L0=L0, C0=C0,
                                layers=layer_cfg, n_w=len(args) - 2)

    out_flat = pl.pallas_call(
        kernel,
        out_shape=jax.ShapeDtypeStruct((C_last, R * P), jnp.float32),
        grid=(R // TR,),
        in_specs=in_specs,
        out_specs=pl.BlockSpec((C_last, FLAT), lambda i: (0, i)),
        scratch_shapes=[pltpu.VMEM((C0, FLAT), jnp.float32)],
        compiler_params=pltpu.CompilerParams(
            dimension_semantics=("parallel",)),
    )(*args)

    # Unflatten the lane-dense slab once, outside the kernel.
    out = out_flat.reshape(C_last, R, P)[:, :, a_fin:a_fin + L_fin]
    return jnp.transpose(out, (1, 0, 2))           # (rows, C_last, L_fin)


# ---------------------------------------------------------------------------
# TCNBlock forward (glue in plain JAX, hot path = one fused Pallas kernel)
# ---------------------------------------------------------------------------
def tcn_block_forward(X, params, kernel_size):
    # X: (batch, num_nodes, in_channels, num_timesteps)
    Xp = jnp.transpose(X, (0, 2, 1, 3))            # torch permute(0,2,1,3) -> NCHW
    B, C, N, T = Xp.shape
    rows = jnp.transpose(Xp, (0, 2, 1, 3)).reshape(B * N, C, T)
    y = tcn_stack_pallas(rows, params, kernel_size)
    C_out, T_out = y.shape[1], y.shape[2]
    return y.reshape(B, N, C_out, T_out).transpose(0, 2, 1, 3)   # (B, C_out, N, T_out)


# ---------------------------------------------------------------------------
# Pure-JAX reference (same math) for sanity checking the Pallas kernel.
# ---------------------------------------------------------------------------
def _dilated_conv_ref(x, w, b, dilation, relu):
    K = w.shape[0]
    L_out = x.shape[-1] - (K - 1) * dilation
    out = jnp.zeros((x.shape[0], w.shape[1], L_out), jnp.float32)
    for k in range(K):
        xk = x[:, :, k * dilation:k * dilation + L_out]
        out = out + jnp.einsum("oc,rcl->rol", w[k], xk)
    out = out + b[None]
    return jnp.maximum(out, 0.0) if relu else out


def temporal_block_ref(x, p, dilation, kernel_size):
    d, K = dilation, kernel_size
    pad = (K - 1) * d
    xp = jnp.pad(x, ((0, 0), (0, 0), (pad, pad)))
    y1 = _dilated_conv_ref(xp, p["w1"], p["b1"], d, True)          # L + 2d
    y1p = jnp.pad(y1, ((0, 0), (0, 0), (pad, pad)))
    y2 = _dilated_conv_ref(y1p, p["w2"], p["b2"], d, True)         # L + 4d
    if p["wd"] is not None:
        res = jnp.einsum("oc,rcl->rol", p["wd"], x) + p["bd"][None]
    else:
        res = x
    res = jnp.pad(res, ((0, 0), (0, 0), (pad, pad)))               # L + 4d
    return jnp.maximum(y2 + res, 0.0)


def tcn_block_forward_ref(X, params, kernel_size):
    Xp = jnp.transpose(X, (0, 2, 1, 3))
    B, C, N, T = Xp.shape
    x = jnp.transpose(Xp, (0, 2, 1, 3)).reshape(B * N, C, T)
    for i, p in enumerate(params):
        x = temporal_block_ref(x, p, 2 ** i, kernel_size)
    C_out, T_out = x.shape[1], x.shape[2]
    return x.reshape(B, N, C_out, T_out).transpose(0, 2, 1, 3)


# ---------------------------------------------------------------------------
# Deterministic parameter init (PyTorch Conv default: U(-1/sqrt(fan_in), ...))
# ---------------------------------------------------------------------------
def init_params(key, in_channels, channel_size, kernel_size):
    params = []
    c_prev = in_channels
    for c_out in channel_size:
        key, k1, k2, k3, k4, k5, k6 = jax.random.split(key, 7)
        b1_ = 1.0 / math.sqrt(c_prev * kernel_size)
        b2_ = 1.0 / math.sqrt(c_out * kernel_size)
        p = {
            "w1": jax.random.uniform(k1, (kernel_size, c_out, c_prev),
                                     minval=-b1_, maxval=b1_),
            "b1": jax.random.uniform(k2, (c_out, 1), minval=-b1_, maxval=b1_),
            "w2": jax.random.uniform(k3, (kernel_size, c_out, c_out),
                                     minval=-b2_, maxval=b2_),
            "b2": jax.random.uniform(k4, (c_out, 1), minval=-b2_, maxval=b2_),
            "wd": None,
            "bd": None,
        }
        if c_prev != c_out:
            bd_ = 1.0 / math.sqrt(c_prev)
            p["wd"] = jax.random.uniform(k5, (c_out, c_prev),
                                         minval=-bd_, maxval=bd_)
            p["bd"] = jax.random.uniform(k6, (c_out, 1), minval=-bd_, maxval=bd_)
        params.append(p)
        c_prev = c_out
    return params


if __name__ == "__main__":
    B, N, C_in, T = 2, 4, 4, 16
    channel_size = [8, 8]          # layer_num = 2
    kernel_size = 3

    key = jax.random.PRNGKey(0)
    kx, kp = jax.random.split(key)
    X = jax.random.normal(kx, (B, N, C_in, T), dtype=jnp.float32)
    params = init_params(kp, C_in, channel_size, kernel_size)

    fwd = jax.jit(lambda X_, params_: tcn_block_forward(X_, params_, kernel_size))
    out = jax.block_until_ready(fwd(X, params))

    expected_T = T + 4 * (2 ** len(channel_size) - 1)   # cal_linear_num
    assert out.shape == (B, channel_size[-1], N, expected_T), out.shape

    ref = tcn_block_forward_ref(X, params, kernel_size)
    assert jnp.allclose(out, ref, atol=1e-4, rtol=1e-4), "mismatch vs reference"

    print("KERNEL_OK")
</pallas_src>

<mosaic_0001>
module attributes {stable_mosaic.version = 11 : i64} {
  func.func @kernel(%arg0: i32, %arg1: memref<1x512xi32, #tpu.memory_space<vmem>>, %arg2: memref<4x4x16xf32, #tpu.memory_space<vmem>>, %arg3: memref<3x8x4xf32, #tpu.memory_space<vmem>>, %arg4: memref<8x1xf32, #tpu.memory_space<vmem>>, %arg5: memref<3x8x8xf32, #tpu.memory_space<vmem>>, %arg6: memref<8x1xf32, #tpu.memory_space<vmem>>, %arg7: memref<8x4xf32, #tpu.memory_space<vmem>>, %arg8: memref<8x1xf32, #tpu.memory_space<vmem>>, %arg9: memref<3x8x8xf32, #tpu.memory_space<vmem>>, %arg10: memref<8x1xf32, #tpu.memory_space<vmem>>, %arg11: memref<3x8x8xf32, #tpu.memory_space<vmem>>, %arg12: memref<8x1xf32, #tpu.memory_space<vmem>>, %arg13: memref<8x512xf32, #tpu.memory_space<vmem>>, %arg14: memref<4x512xf32, #tpu.memory_space<vmem>>) attributes {dimension_semantics = [#tpu.dimension_semantics<parallel>], iteration_bounds = array<i64: 2>, scalar_prefetch = 0 : i64, scratch_operands = 1 : i64, tpu.core_type = #tpu.core_type<tc>, window_params = [{pipeline_mode = #tpu.pipeline_mode<synchronous>, transform_indices = @transform_0, window_bounds = array<i64: 1, 512>}, {transform_indices = @transform_1, window_bounds = array<i64: 4, 4, 16>}, {pipeline_mode = #tpu.pipeline_mode<synchronous>, transform_indices = @transform_2, window_bounds = array<i64: 3, 8, 4>}, {pipeline_mode = #tpu.pipeline_mode<synchronous>, transform_indices = @transform_3, window_bounds = array<i64: 8, 1>}, {pipeline_mode = #tpu.pipeline_mode<synchronous>, transform_indices = @transform_4, window_bounds = array<i64: 3, 8, 8>}, {pipeline_mode = #tpu.pipeline_mode<synchronous>, transform_indices = @transform_5, window_bounds = array<i64: 8, 1>}, {pipeline_mode = #tpu.pipeline_mode<synchronous>, transform_indices = @transform_6, window_bounds = array<i64: 8, 4>}, {pipeline_mode = #tpu.pipeline_mode<synchronous>, transform_indices = @transform_7, window_bounds = array<i64: 8, 1>}, {pipeline_mode = #tpu.pipeline_mode<synchronous>, transform_indices = @transform_8, window_bounds = array<i64: 3, 8, 8>}, {pipeline_mode = #tpu.pipeline_mode<synchronous>, transform_indices = @transform_9, window_bounds = array<i64: 8, 1>}, {pipeline_mode = #tpu.pipeline_mode<synchronous>, transform_indices = @transform_10, window_bounds = array<i64: 3, 8, 8>}, {pipeline_mode = #tpu.pipeline_mode<synchronous>, transform_indices = @transform_11, window_bounds = array<i64: 8, 1>}, {transform_indices = @transform_12, window_bounds = array<i64: 8, 512>}]} {
    %c0 = arith.constant 0 : index
    %c0_0 = arith.constant 0 : index
    %0 = vector.load %arg1[%c0, %c0_0] : memref<1x512xi32, #tpu.memory_space<vmem>>, vector<1x512xi32>
    %cst = arith.constant 0.000000e+00 : f32
    %1 = vector.broadcast %cst : f32 to vector<4x512xf32>
    %c0_1 = arith.constant 0 : index
    %c0_2 = arith.constant 0 : index
    %2 = vector.load %arg14[%c0_1, %c0_2] : memref<4x512xf32, #tpu.memory_space<vmem>>, vector<4x512xf32>
    tpu.vector_store %arg14[%c0_1, %c0_2], %1 {strides = array<i32>} : memref<4x512xf32, #tpu.memory_space<vmem>>, vector<4x512xf32>,
    %c0_3 = arith.constant 0 : index
    %c0_4 = arith.constant 0 : index
    %c0_5 = arith.constant 0 : index
    %3 = vector.load %arg2[%c0_3, %c0_4, %c0_5] : memref<4x4x16xf32, #tpu.memory_space<vmem>>, vector<1x4x16xf32>
    %4 = vector.shape_cast %3 : vector<1x4x16xf32> to vector<4x16xf32>
    %c0_6 = arith.constant 0 : index
    %c8 = arith.constant 8 : index
    %5 = vector.load %arg14[%c0_6, %c8] : memref<4x512xf32, #tpu.memory_space<vmem>>, vector<4x16xf32>
    tpu.vector_store %arg14[%c0_6, %c8], %4 {strides = array<i32>} : memref<4x512xf32, #tpu.memory_space<vmem>>, vector<4x16xf32>,
    %c1 = arith.constant 1 : index
    %c0_7 = arith.constant 0 : index
    %c0_8 = arith.constant 0 : index
    %6 = vector.load %arg2[%c1, %c0_7, %c0_8] : memref<4x4x16xf32, #tpu.memory_space<vmem>>, vector<1x4x16xf32>
    %7 = vector.shape_cast %6 : vector<1x4x16xf32> to vector<4x16xf32>
    %c0_9 = arith.constant 0 : index
    %c136 = arith.constant 136 : index
    %8 = vector.load %arg14[%c0_9, %c136] : memref<4x512xf32, #tpu.memory_space<vmem>>, vector<4x16xf32>
    tpu.vector_store %arg14[%c0_9, %c136], %7 {strides = array<i32>} : memref<4x512xf32, #tpu.memory_space<vmem>>, vector<4x16xf32>,
    %c2 = arith.constant 2 : index
    %c0_10 = arith.constant 0 : index
    %c0_11 = arith.constant 0 : index
    %9 = vector.load %arg2[%c2, %c0_10, %c0_11] : memref<4x4x16xf32, #tpu.memory_space<vmem>>, vector<1x4x16xf32>
    %10 = vector.shape_cast %9 : vector<1x4x16xf32> to vector<4x16xf32>
    %c0_12 = arith.constant 0 : index
    %c264 = arith.constant 264 : index
    %11 = vector.load %arg14[%c0_12, %c264] : memref<4x512xf32, #tpu.memory_space<vmem>>, vector<4x16xf32>
    tpu.vector_store %arg14[%c0_12, %c264], %10 {strides = array<i32>} : memref<4x512xf32, #tpu.memory_space<vmem>>, vector<4x16xf32>,
    %c3 = arith.constant 3 : index
    %c0_13 = arith.constant 0 : index
    %c0_14 = arith.constant 0 : index
    %12 = vector.load %arg2[%c3, %c0_13, %c0_14] : memref<4x4x16xf32, #tpu.memory_space<vmem>>, vector<1x4x16xf32>
    %13 = vector.shape_cast %12 : vector<1x4x16xf32> to vector<4x16xf32>
    %c0_15 = arith.constant 0 : index
    %c392 = arith.constant 392 : index
    %14 = vector.load %arg14[%c0_15, %c392] : memref<4x512xf32, #tpu.memory_space<vmem>>, vector<4x16xf32>
    tpu.vector_store %arg14[%c0_15, %c392], %13 {strides = array<i32>} : memref<4x512xf32, #tpu.memory_space<vmem>>, vector<4x16xf32>,
    %c0_16 = arith.constant 0 : index
    %c0_17 = arith.constant 0 : index
    %15 = vector.load %arg14[%c0_16, %c0_17] : memref<4x512xf32, #tpu.memory_space<vmem>>, vector<4x512xf32>
    %c1_18 = arith.constant 1 : index
    %c0_19 = arith.constant 0 : index
    %c0_20 = arith.constant 0 : index
    %16 = vector.load %arg3[%c1_18, %c0_19, %c0_20] : memref<3x8x4xf32, #tpu.memory_space<vmem>>, vector<1x8x4xf32>
    %17 = vector.shape_cast %16 : vector<1x8x4xf32> to vector<8x4xf32>
    %cst_21 = arith.constant dense<0.000000e+00> : vector<8x512xf32>
    %18 = tpu.matmul %17, %15, %cst_21 {dimension_numbers = #tpu.dot_dimension_numbers<[1], [0], [0], [1], [0, 0, 1, 1], [], []>} : vector<8x4xf32>, vector<4x512xf32>, vector<8x512xf32> -> vector<8x512xf32>
    %c0_22 = arith.constant 0 : index
    %c0_23 = arith.constant 0 : index
    %c0_24 = arith.constant 0 : index
    %19 = vector.load %arg3[%c0_22, %c0_23, %c0_24] : memref<3x8x4xf32, #tpu.memory_space<vmem>>, vector<1x8x4xf32>
    %20 = vector.shape_cast %19 : vector<1x8x4xf32> to vector<8x4xf32>
    %cst_25 = arith.constant 0.000000e+00 : f32
    %21 = vector.broadcast %cst_25 : f32 to vector<4x1xf32>
    %22 = vector.extract_strided_slice %15 {offsets = [0, 0], sizes = [4, 511], strides = [1, 1]} : vector<4x512xf32> to vector<4x511xf32>
    %23 = tpu.concatenate %21, %22 in 1 : vector<4x1xf32>, vector<4x511xf32> -> vector<4x512xf32>
    %cst_26 = arith.constant dense<0.000000e+00> : vector<8x512xf32>
    %24 = tpu.matmul %20, %23, %cst_26 {dimension_numbers = #tpu.dot_dimension_numbers<[1], [0], [0], [1], [0, 0, 1, 1], [], []>} : vector<8x4xf32>, vector<4x512xf32>, vector<8x512xf32> -> vector<8x512xf32>
    %25 = arith.addf %18, %24 : vector<8x512xf32>
    %c2_27 = arith.constant 2 : index
    %c0_28 = arith.constant 0 : index
    %c0_29 = arith.constant 0 : index
    %26 = vector.load %arg3[%c2_27, %c0_28, %c0_29] : memref<3x8x4xf32, #tpu.memory_space<vmem>>, vector<1x8x4xf32>
    %27 = vector.shape_cast %26 : vector<1x8x4xf32> to vector<8x4xf32>
    %cst_30 = arith.constant 0.000000e+00 : f32
    %28 = vector.broadcast %cst_30 : f32 to vector<4x1xf32>
    %29 = vector.extract_strided_slice %15 {offsets = [0, 1], sizes = [4, 511], strides = [1, 1]} : vector<4x512xf32> to vector<4x511xf32>
    %30 = tpu.concatenate %29, %28 in 1 : vector<4x511xf32>, vector<4x1xf32> -> vector<4x512xf32>
    %cst_31 = arith.constant dense<0.000000e+00> : vector<8x512xf32>
    %31 = tpu.matmul %27, %30, %cst_31 {dimension_numbers = #tpu.dot_dimension_numbers<[1], [0], [0], [1], [0, 0, 1, 1], [], []>} : vector<8x4xf32>, vector<4x512xf32>, vector<8x512xf32> -> vector<8x512xf32>
    %32 = arith.addf %25, %31 : vector<8x512xf32>
    %c0_32 = arith.constant 0 : index
    %c0_33 = arith.constant 0 : index
    %33 = vector.load %arg4[%c0_32, %c0_33] : memref<8x1xf32, #tpu.memory_space<vmem>>, vector<8x1xf32>
    %34 = vector.shape_cast %33 : vector<8x1xf32> to vector<8x1xf32>
    %35 = vector.broadcast %34 : vector<8x1xf32> to vector<8x512xf32>
    %36 = arith.addf %32, %35 : vector<8x512xf32>
    %cst_34 = arith.constant 0.000000e+00 : f32
    %37 = vector.broadcast %cst_34 : f32 to vector<8x512xf32>
    %38 = arith.maximumf %36, %37 : vector<8x512xf32>
    %39 = vector.shape_cast %0 : vector<1x512xi32> to vector<1x512xi32>
    %40 = vector.broadcast %39 : vector<1x512xi32> to vector<8x512xi32>
    %c7_i32 = arith.constant 7 : i32
    %41 = vector.broadcast %c7_i32 : i32 to vector<8x512xi32>
    %42 = arith.cmpi sge, %40, %41 : vector<8x512xi32>
    %c25_i32 = arith.constant 25 : i32
    %43 = vector.broadcast %c25_i32 : i32 to vector<8x512xi32>
    %44 = arith.cmpi slt, %40, %43 : vector<8x512xi32>
    %45 = arith.andi %42, %44 : vector<8x512xi1>
    %cst_35 = arith.constant 0.000000e+00 : f32
    %46 = vector.broadcast %cst_35 : f32 to vector<8x512xf32>
    %47 = arith.select %45, %38, %46 : vector<8x512xi1>, vector<8x512xf32>
    %c1_36 = arith.constant 1 : index
    %c0_37 = arith.constant 0 : index
    %c0_38 = arith.constant 0 : index
    %48 = vector.load %arg5[%c1_36, %c0_37, %c0_38] : memref<3x8x8xf32, #tpu.memory_space<vmem>>, vector<1x8x8xf32>
    %49 = vector.shape_cast %48 : vector<1x8x8xf32> to vector<8x8xf32>
    %cst_39 = arith.constant dense<0.000000e+00> : vector<8x512xf32>
    %50 = tpu.matmul %49, %47, %cst_39 {dimension_numbers = #tpu.dot_dimension_numbers<[1], [0], [0], [1], [0, 0, 1, 1], [], []>} : vector<8x8xf32>, vector<8x512xf32>, vector<8x512xf32> -> vector<8x512xf32>
    %c0_40 = arith.constant 0 : index
    %c0_41 = arith.constant 0 : index
    %c0_42 = arith.constant 0 : index
    %51 = vector.load %arg5[%c0_40, %c0_41, %c0_42] : memref<3x8x8xf32, #tpu.memory_space<vmem>>, vector<1x8x8xf32>
    %52 = vector.shape_cast %51 : vector<1x8x8xf32> to vector<8x8xf32>
    %cst_43 = arith.constant 0.000000e+00 : f32
    %53 = vector.broadcast %cst_43 : f32 to vector<8x1xf32>
    %54 = vector.extract_strided_slice %47 {offsets = [0, 0], sizes = [8, 511], strides = [1, 1]} : vector<8x512xf32> to vector<8x511xf32>
    %55 = tpu.concatenate %53, %54 in 1 : vector<8x1xf32>, vector<8x511xf32> -> vector<8x512xf32>
    %cst_44 = arith.constant dense<0.000000e+00> : vector<8x512xf32>
    %56 = tpu.matmul %52, %55, %cst_44 {dimension_numbers = #tpu.dot_dimension_numbers<[1], [0], [0], [1], [0, 0, 1, 1], [], []>} : vector<8x8xf32>, vector<8x512xf32>, vector<8x512xf32> -> vector<8x512xf32>
    %57 = arith.addf %50, %56 : vector<8x512xf32>
    %c2_45 = arith.constant 2 : index
    %c0_46 = arith.constant 0 : index
    %c0_47 = arith.constant 0 : index
    %58 = vector.load %arg5[%c2_45, %c0_46, %c0_47] : memref<3x8x8xf32, #tpu.memory_space<vmem>>, vector<1x8x8xf32>
    %59 = vector.shape_cast %58 : vector<1x8x8xf32> to vector<8x8xf32>
    %cst_48 = arith.constant 0.000000e+00 : f32
    %60 = vector.broadcast %cst_48 : f32 to vector<8x1xf32>
    %61 = vector.extract_strided_slice %47 {offsets = [0, 1], sizes = [8, 511], strides = [1, 1]} : vector<8x512xf32> to vector<8x511xf32>
    %62 = tpu.concatenate %61, %60 in 1 : vector<8x511xf32>, vector<8x1xf32> -> vector<8x512xf32>
    %cst_49 = arith.constant dense<0.000000e+00> : vector<8x512xf32>
    %63 = tpu.matmul %59, %62, %cst_49 {dimension_numbers = #tpu.dot_dimension_numbers<[1], [0], [0], [1], [0, 0, 1, 1], [], []>} : vector<8x8xf32>, vector<8x512xf32>, vector<8x512xf32> -> vector<8x512xf32>
    %64 = arith.addf %57, %63 : vector<8x512xf32>
    %c0_50 = arith.constant 0 : index
    %c0_51 = arith.constant 0 : index
    %65 = vector.load %arg6[%c0_50, %c0_51] : memref<8x1xf32, #tpu.memory_space<vmem>>, vector<8x1xf32>
    %66 = vector.shape_cast %65 : vector<8x1xf32> to vector<8x1xf32>
    %67 = vector.broadcast %66 : vector<8x1xf32> to vector<8x512xf32>
    %68 = arith.addf %64, %67 : vector<8x512xf32>
    %cst_52 = arith.constant 0.000000e+00 : f32
    %69 = vector.broadcast %cst_52 : f32 to vector<8x512xf32>
    %70 = arith.maximumf %68, %69 : vector<8x512xf32>
    %c0_53 = arith.constant 0 : index
    %c0_54 = arith.constant 0 : index
    %71 = vector.load %arg7[%c0_53, %c0_54] : memref<8x4xf32, #tpu.memory_space<vmem>>, vector<8x4xf32>
    %cst_55 = arith.constant dense<0.000000e+00> : vector<8x512xf32>
    %72 = tpu.matmul %71, %15, %cst_55 {dimension_numbers = #tpu.dot_dimension_numbers<[1], [0], [0], [1], [0, 0, 1, 1], [], []>} : vector<8x4xf32>, vector<4x512xf32>, vector<8x512xf32> -> vector<8x512xf32>
    %c0_56 = arith.constant 0 : index
    %c0_57 = arith.constant 0 : index
    %73 = vector.load %arg8[%c0_56, %c0_57] : memref<8x1xf32, #tpu.memory_space<vmem>>, vector<8x1xf32>
    %74 = vector.shape_cast %73 : vector<8x1xf32> to vector<8x1xf32>
    %75 = vector.broadcast %74 : vector<8x1xf32> to vector<8x512xf32>
    %76 = arith.addf %72, %75 : vector<8x512xf32>
    %77 = vector.shape_cast %0 : vector<1x512xi32> to vector<1x512xi32>
    %78 = vector.broadcast %77 : vector<1x512xi32> to vector<8x512xi32>
    %c8_i32 = arith.constant 8 : i32
    %79 = vector.broadcast %c8_i32 : i32 to vector<8x512xi32>
    %80 = arith.cmpi sge, %78, %79 : vector<8x512xi32>
    %c24_i32 = arith.constant 24 : i32
    %81 = vector.broadcast %c24_i32 : i32 to vector<8x512xi32>
    %82 = arith.cmpi slt, %78, %81 : vector<8x512xi32>
    %83 = arith.andi %80, %82 : vector<8x512xi1>
    %cst_58 = arith.constant 0.000000e+00 : f32
    %84 = vector.broadcast %cst_58 : f32 to vector<8x512xf32>
    %85 = arith.select %83, %76, %84 : vector<8x512xi1>, vector<8x512xf32>
    %86 = arith.addf %70, %85 : vector<8x512xf32>
    %cst_59 = arith.constant 0.000000e+00 : f32
    %87 = vector.broadcast %cst_59 : f32 to vector<8x512xf32>
    %88 = arith.maximumf %86, %87 : vector<8x512xf32>
    %89 = vector.shape_cast %0 : vector<1x512xi32> to vector<1x512xi32>
    %90 = vector.broadcast %89 : vector<1x512xi32> to vector<8x512xi32>
    %c6_i32 = arith.constant 6 : i32
    %91 = vector.broadcast %c6_i32 : i32 to vector<8x512xi32>
    %92 = arith.cmpi sge, %90, %91 : vector<8x512xi32>
    %c26_i32 = arith.constant 26 : i32
    %93 = vector.broadcast %c26_i32 : i32 to vector<8x512xi32>
    %94 = arith.cmpi slt, %90, %93 : vector<8x512xi32>
    %95 = arith.andi %92, %94 : vector<8x512xi1>
    %cst_60 = arith.constant 0.000000e+00 : f32
    %96 = vector.broadcast %cst_60 : f32 to vector<8x512xf32>
    %97 = arith.select %95, %88, %96 : vector<8x512xi1>, vector<8x512xf32>
    %c1_61 = arith.constant 1 : index
    %c0_62 = arith.constant 0 : index
    %c0_63 = arith.constant 0 : index
    %98 = vector.load %arg9[%c1_61, %c0_62, %c0_63] : memref<3x8x8xf32, #tpu.memory_space<vmem>>, vector<1x8x8xf32>
    %99 = vector.shape_cast %98 : vector<1x8x8xf32> to vector<8x8xf32>
    %cst_64 = arith.constant dense<0.000000e+00> : vector<8x512xf32>
    %100 = tpu.matmul %99, %97, %cst_64 {dimension_numbers = #tpu.dot_dimension_numbers<[1], [0], [0], [1], [0, 0, 1, 1], [], []>} : vector<8x8xf32>, vector<8x512xf32>, vector<8x512xf32> -> vector<8x512xf32>
    %c0_65 = arith.constant 0 : index
    %c0_66 = arith.constant 0 : index
    %c0_67 = arith.constant 0 : index
    %101 = vector.load %arg9[%c0_65, %c0_66, %c0_67] : memref<3x8x8xf32, #tpu.memory_space<vmem>>, vector<1x8x8xf32>
    %102 = vector.shape_cast %101 : vector<1x8x8xf32> to vector<8x8xf32>
    %cst_68 = arith.constant 0.000000e+00 : f32
    %103 = vector.broadcast %cst_68 : f32 to vector<8x2xf32>
    %104 = vector.extract_strided_slice %97 {offsets = [0, 0], sizes = [8, 510], strides = [1, 1]} : vector<8x512xf32> to vector<8x510xf32>
    %105 = tpu.concatenate %103, %104 in 1 : vector<8x2xf32>, vector<8x510xf32> -> vector<8x512xf32>
    %cst_69 = arith.constant dense<0.000000e+00> : vector<8x512xf32>
    %106 = tpu.matmul %102, %105, %cst_69 {dimension_numbers = #tpu.dot_dimension_numbers<[1], [0], [0], [1], [0, 0, 1, 1], [], []>} : vector<8x8xf32>, vector<8x512xf32>, vector<8x512xf32> -> vector<8x512xf32>
    %107 = arith.addf %100, %106 : vector<8x512xf32>
    %c2_70 = arith.constant 2 : index
    %c0_71 = arith.constant 0 : index
    %c0_72 = arith.constant 0 : index
    %108 = vector.load %arg9[%c2_70, %c0_71, %c0_72] : memref<3x8x8xf32, #tpu.memory_space<vmem>>, vector<1x8x8xf32>
    %109 = vector.shape_cast %108 : vector<1x8x8xf32> to vector<8x8xf32>
    %cst_73 = arith.constant 0.000000e+00 : f32
    %110 = vector.broadcast %cst_73 : f32 to vector<8x2xf32>
    %111 = vector.extract_strided_slice %97 {offsets = [0, 2], sizes = [8, 510], strides = [1, 1]} : vector<8x512xf32> to vector<8x510xf32>
    %112 = tpu.concatenate %111, %110 in 1 : vector<8x510xf32>, vector<8x2xf32> -> vector<8x512xf32>
    %cst_74 = arith.constant dense<0.000000e+00> : vector<8x512xf32>
    %113 = tpu.matmul %109, %112, %cst_74 {dimension_numbers = #tpu.dot_dimension_numbers<[1], [0], [0], [1], [0, 0, 1, 1], [], []>} : vector<8x8xf32>, vector<8x512xf32>, vector<8x512xf32> -> vector<8x512xf32>
    %114 = arith.addf %107, %113 : vector<8x512xf32>
    %c0_75 = arith.constant 0 : index
    %c0_76 = arith.constant 0 : index
    %115 = vector.load %arg10[%c0_75, %c0_76] : memref<8x1xf32, #tpu.memory_space<vmem>>, vector<8x1xf32>
    %116 = vector.shape_cast %115 : vector<8x1xf32> to vector<8x1xf32>
    %117 = vector.broadcast %116 : vector<8x1xf32> to vector<8x512xf32>
    %118 = arith.addf %114, %117 : vector<8x512xf32>
    %cst_77 = arith.constant 0.000000e+00 : f32
    %119 = vector.broadcast %cst_77 : f32 to vector<8x512xf32>
    %120 = arith.maximumf %118, %119 : vector<8x512xf32>
    %121 = vector.shape_cast %0 : vector<1x512xi32> to vector<1x512xi32>
    %122 = vector.broadcast %121 : vector<1x512xi32> to vector<8x512xi32>
    %c4_i32 = arith.constant 4 : i32
    %123 = vector.broadcast %c4_i32 : i32 to vector<8x512xi32>
    %124 = arith.cmpi sge, %122, %123 : vector<8x512xi32>
    %c28_i32 = arith.constant 28 : i32
    %125 = vector.broadcast %c28_i32 : i32 to vector<8x512xi32>
    %126 = arith.cmpi slt, %122, %125 : vector<8x512xi32>
    %127 = arith.andi %124, %126 : vector<8x512xi1>
    %cst_78 = arith.constant 0.000000e+00 : f32
    %128 = vector.broadcast %cst_78 : f32 to vector<8x512xf32>
    %129 = arith.select %127, %120, %128 : vector<8x512xi1>, vector<8x512xf32>
    %c1_79 = arith.constant 1 : index
    %c0_80 = arith.constant 0 : index
    %c0_81 = arith.constant 0 : index
    %130 = vector.load %arg11[%c1_79, %c0_80, %c0_81] : memref<3x8x8xf32, #tpu.memory_space<vmem>>, vector<1x8x8xf32>
    %131 = vector.shape_cast %130 : vector<1x8x8xf32> to vector<8x8xf32>
    %cst_82 = arith.constant dense<0.000000e+00> : vector<8x512xf32>
    %132 = tpu.matmul %131, %129, %cst_82 {dimension_numbers = #tpu.dot_dimension_numbers<[1], [0], [0], [1], [0, 0, 1, 1], [], []>} : vector<8x8xf32>, vector<8x512xf32>, vector<8x512xf32> -> vector<8x512xf32>
    %c0_83 = arith.constant 0 : index
    %c0_84 = arith.constant 0 : index
    %c0_85 = arith.constant 0 : index
    %133 = vector.load %arg11[%c0_83, %c0_84, %c0_85] : memref<3x8x8xf32, #tpu.memory_space<vmem>>, vector<1x8x8xf32>
    %134 = vector.shape_cast %133 : vector<1x8x8xf32> to vector<8x8xf32>
    %cst_86 = arith.constant 0.000000e+00 : f32
    %135 = vector.broadcast %cst_86 : f32 to vector<8x2xf32>
    %136 = vector.extract_strided_slice %129 {offsets = [0, 0], sizes = [8, 510], strides = [1, 1]} : vector<8x512xf32> to vector<8x510xf32>
    %137 = tpu.concatenate %135, %136 in 1 : vector<8x2xf32>, vector<8x510xf32> -> vector<8x512xf32>
    %cst_87 = arith.constant dense<0.000000e+00> : vector<8x512xf32>
    %138 = tpu.matmul %134, %137, %cst_87 {dimension_numbers = #tpu.dot_dimension_numbers<[1], [0], [0], [1], [0, 0, 1, 1], [], []>} : vector<8x8xf32>, vector<8x512xf32>, vector<8x512xf32> -> vector<8x512xf32>
    %139 = arith.addf %132, %138 : vector<8x512xf32>
    %c2_88 = arith.constant 2 : index
    %c0_89 = arith.constant 0 : index
    %c0_90 = arith.constant 0 : index
    %140 = vector.load %arg11[%c2_88, %c0_89, %c0_90] : memref<3x8x8xf32, #tpu.memory_space<vmem>>, vector<1x8x8xf32>
    %141 = vector.shape_cast %140 : vector<1x8x8xf32> to vector<8x8xf32>
    %cst_91 = arith.constant 0.000000e+00 : f32
    %142 = vector.broadcast %cst_91 : f32 to vector<8x2xf32>
    %143 = vector.extract_strided_slice %129 {offsets = [0, 2], sizes = [8, 510], strides = [1, 1]} : vector<8x512xf32> to vector<8x510xf32>
    %144 = tpu.concatenate %143, %142 in 1 : vector<8x510xf32>, vector<8x2xf32> -> vector<8x512xf32>
    %cst_92 = arith.constant dense<0.000000e+00> : vector<8x512xf32>
    %145 = tpu.matmul %141, %144, %cst_92 {dimension_numbers = #tpu.dot_dimension_numbers<[1], [0], [0], [1], [0, 0, 1, 1], [], []>} : vector<8x8xf32>, vector<8x512xf32>, vector<8x512xf32> -> vector<8x512xf32>
    %146 = arith.addf %139, %145 : vector<8x512xf32>
    %c0_93 = arith.constant 0 : index
    %c0_94 = arith.constant 0 : index
    %147 = vector.load %arg12[%c0_93, %c0_94] : memref<8x1xf32, #tpu.memory_space<vmem>>, vector<8x1xf32>
    %148 = vector.shape_cast %147 : vector<8x1xf32> to vector<8x1xf32>
    %149 = vector.broadcast %148 : vector<8x1xf32> to vector<8x512xf32>
    %150 = arith.addf %146, %149 : vector<8x512xf32>
    %cst_95 = arith.constant 0.000000e+00 : f32
    %151 = vector.broadcast %cst_95 : f32 to vector<8x512xf32>
    %152 = arith.maximumf %150, %151 : vector<8x512xf32>
    %153 = arith.addf %152, %97 : vector<8x512xf32>
    %cst_96 = arith.constant 0.000000e+00 : f32
    %154 = vector.broadcast %cst_96 : f32 to vector<8x512xf32>
    %155 = arith.maximumf %153, %154 : vector<8x512xf32>
    %156 = vector.shape_cast %0 : vector<1x512xi32> to vector<1x512xi32>
    %157 = vector.broadcast %156 : vector<1x512xi32> to vector<8x512xi32>
    %c2_i32 = arith.constant 2 : i32
    %158 = vector.broadcast %c2_i32 : i32 to vector<8x512xi32>
    %159 = arith.cmpi sge, %157, %158 : vector<8x512xi32>
    %c30_i32 = arith.constant 30 : i32
    %160 = vector.broadcast %c30_i32 : i32 to vector<8x512xi32>
    %161 = arith.cmpi slt, %157, %160 : vector<8x512xi32>
    %162 = arith.andi %159, %161 : vector<8x512xi1>
    %cst_97 = arith.constant 0.000000e+00 : f32
    %163 = vector.broadcast %cst_97 : f32 to vector<8x512xf32>
    %164 = arith.select %162, %155, %163 : vector<8x512xi1>, vector<8x512xf32>
    %c0_98 = arith.constant 0 : index
    %c0_99 = arith.constant 0 : index
    %165 = vector.load %arg13[%c0_98, %c0_99] : memref<8x512xf32, #tpu.memory_space<vmem>>, vector<8x512xf32>
    tpu.vector_store %arg13[%c0_98, %c0_99], %164 {strides = array<i32>} : memref<8x512xf32, #tpu.memory_space<vmem>>, vector<8x512xf32>,
    return
  }
  func.func @transform_0(%arg0: i32) -> (i32, i32) {
    %c0_i32 = arith.constant 0 : i32
    %c0_i32_0 = arith.constant 0 : i32
    %c0_i32_1 = arith.constant 0 : i32
    return %c0_i32, %c0_i32_0 : i32, i32
  }
  func.func @transform_1(%arg0: i32) -> (i32, i32, i32) {
    %c0_i32 = arith.constant 0 : i32
    %c0_i32_0 = arith.constant 0 : i32
    %c0_i32_1 = arith.constant 0 : i32
    return %arg0, %c0_i32, %c0_i32_0 : i32, i32, i32
  }
  func.func @transform_2(%arg0: i32) -> (i32, i32, i32) {
    %c0_i32 = arith.constant 0 : i32
    %c0_i32_0 = arith.constant 0 : i32
    %c0_i32_1 = arith.constant 0 : i32
    %c0_i32_2 = arith.constant 0 : i32
    return %c0_i32, %c0_i32_0, %c0_i32_1 : i32, i32, i32
  }
  func.func @transform_3(%arg0: i32) -> (i32, i32) {
    %c0_i32 = arith.constant 0 : i32
    %c0_i32_0 = arith.constant 0 : i32
    %c0_i32_1 = arith.constant 0 : i32
    return %c0_i32, %c0_i32_0 : i32, i32
  }
  func.func @transform_4(%arg0: i32) -> (i32, i32, i32) {
    %c0_i32 = arith.constant 0 : i32
    %c0_i32_0 = arith.constant 0 : i32
    %c0_i32_1 = arith.constant 0 : i32
    %c0_i32_2 = arith.constant 0 : i32
    return %c0_i32, %c0_i32_0, %c0_i32_1 : i32, i32, i32
  }
  func.func @transform_5(%arg0: i32) -> (i32, i32) {
    %c0_i32 = arith.constant 0 : i32
    %c0_i32_0 = arith.constant 0 : i32
    %c0_i32_1 = arith.constant 0 : i32
    return %c0_i32, %c0_i32_0 : i32, i32
  }
  func.func @transform_6(%arg0: i32) -> (i32, i32) {
    %c0_i32 = arith.constant 0 : i32
    %c0_i32_0 = arith.constant 0 : i32
    %c0_i32_1 = arith.constant 0 : i32
    return %c0_i32, %c0_i32_0 : i32, i32
  }
  func.func @transform_7(%arg0: i32) -> (i32, i32) {
    %c0_i32 = arith.constant 0 : i32
    %c0_i32_0 = arith.constant 0 : i32
    %c0_i32_1 = arith.constant 0 : i32
    return %c0_i32, %c0_i32_0 : i32, i32
  }
  func.func @transform_8(%arg0: i32) -> (i32, i32, i32) {
    %c0_i32 = arith.constant 0 : i32
    %c0_i32_0 = arith.constant 0 : i32
    %c0_i32_1 = arith.constant 0 : i32
    %c0_i32_2 = arith.constant 0 : i32
    return %c0_i32, %c0_i32_0, %c0_i32_1 : i32, i32, i32
  }
  func.func @transform_9(%arg0: i32) -> (i32, i32) {
    %c0_i32 = arith.constant 0 : i32
    %c0_i32_0 = arith.constant 0 : i32
    %c0_i32_1 = arith.constant 0 : i32
    return %c0_i32, %c0_i32_0 : i32, i32
  }
  func.func @transform_10(%arg0: i32) -> (i32, i32, i32) {
    %c0_i32 = arith.constant 0 : i32
    %c0_i32_0 = arith.constant 0 : i32
    %c0_i32_1 = arith.constant 0 : i32
    %c0_i32_2 = arith.constant 0 : i32
    return %c0_i32, %c0_i32_0, %c0_i32_1 : i32, i32, i32
  }
  func.func @transform_11(%arg0: i32) -> (i32, i32) {
    %c0_i32 = arith.constant 0 : i32
    %c0_i32_0 = arith.constant 0 : i32
    %c0_i32_1 = arith.constant 0 : i32
    return %c0_i32, %c0_i32_0 : i32, i32
  }
  func.func @transform_12(%arg0: i32) -> (i32, i32) {
    %c0_i32 = arith.constant 0 : i32
    %c0_i32_0 = arith.constant 0 : i32
    return %c0_i32, %arg0 : i32, i32
  }
}

</mosaic_0001>

<bundles_post_ra>
// kernel: _lambda_.1
= control target key start
LH: loop header
LB: loop body
LE: loop exit
PB: predicated region body
PF: predicated region fallthrough
CT: control target
= control target key end

     0   :  { %s2993_s21 = smov 0   ;;  %s3446_s0 = inlined_call_operand.vmem [shape: s32[1,512], index: 0, kind: input, shape index: {}]   ;;  %s3447_s1 = inlined_call_operand.vmem [shape: f32[8,4,16], index: 1, kind: input, shape index: {}]   ;;  %s3448_s2 = inlined_call_operand.vmem [shape: f32[3,8,4], index: 2, kind: input, shape index: {}]   ;;  %s3449_s3 = inlined_call_operand.vmem [shape: f32[8,1], index: 3, kind: input, shape index: {}]   ;;  %s3450_s4 = inlined_call_operand.vmem [shape: f32[3,8,8], index: 4, kind: input, shape index: {}]   ;;  %s3451_s5 = inlined_call_operand.vmem [shape: f32[8,1], index: 5, kind: input, shape index: {}]   ;;  %s3452_s6 = inlined_call_operand.vmem [shape: f32[8,4], index: 6, kind: input, shape index: {}]   ;;  %s3453_s7 = inlined_call_operand.vmem [shape: f32[8,1], index: 7, kind: input, shape index: {}]   ;;  %s3454_s8 = inlined_call_operand.vmem [shape: f32[3,8,8], index: 8, kind: input, shape index: {}]   ;;  %s3455_s9 = inlined_call_operand.vmem [shape: f32[8,1], index: 9, kind: input, shape index: {}]   ;;  %s3456_s10 = inlined_call_operand.vmem [shape: f32[3,8,8], index: 10, kind: input, shape index: {}]   ;;  %s3457_s11 = inlined_call_operand.vmem [shape: f32[8,1], index: 11, kind: input, shape index: {}]   ;;  %s3458_s12 = inlined_call_operand.vmem [shape: f32[8,1024], index: 12, kind: output, shape index: {}]  }
   0x1 LB: > { %s2777_s22 = sadd.s32 4294967295, %s2919_s21   ;;  %p2781_p0 = scmp.ge.s32.totalorder %s2919_s21, 1  ;;  %s2919_s21 = sphi %s2993_s21, %s22_s21  }
   0x2   : > { %p363_p1 = scmp.lt.s32.totalorder %s2919_s21, 3 }
   0x4   : > { %p364_p2 = pnand %p2781_p0, %p363_p1 }
   0x5   : > { %s2782_s23 = sshll.u32 (!%p364_p2), %s2777_s22, 2  ;;  %v2921_v0 = vmov (!%p364_p2), 0.0   ;;  %s2922_s28 = smov (!%p364_p2), 8   ;;  %vm425_vm0 = vcmask (!%p364_p2), 191552   ;;  %v2925_v13 = vmov (!%p364_p2), 0   ;;  %v954_v14 = vld [vmem:[%s3449_s3] sm:$0xff] (!%p364_p2)  ;;  %v968_v34 = vlaneseq (!%p364_p2) }
   0x6   : > { %367 = sbr.rel (%p364_p2) target bundleno = 1573 (0x625), region = 68  ;;  %p406_p3 = scmp.lt.s32.totalorder (!%p364_p2), %s2782_s23, 7  ;;  %418 = vst [vmem:[#allocation2] sm:$0xff] (!%p364_p2), %v2921_v0  ;;  %419 = vst [vmem:[#allocation2 + $0x8] sm:$0xff] (!%p364_p2), %v2921_v0  ;;  %549 = vmatprep.mubr.f32.mxu0 (!%p364_p2), %v2921_v0  ;;  %620 = vmatprep.mubr.f32.mxu1 (!%p364_p2), %v2921_v0  ;;  %vm465_vm1 = vcmask (!%p364_p2), 7168   ;;  %vm475_vm2 = vcmask (!%p364_p2), 1043456  }
   0x7   : > { %s2923_s29 = smov (!%p364_p2), 1   ;;  %s2924_s30 = smov (!%p364_p2), 127   ;;  %2909 = vset.pattern.permute.xlu0 (!%p364_p2), %v2925_v13  ;;  %2910 = vset.pattern.permute.xlu1 (!%p364_p2), %v2925_v13  ;;  %v452_v18 = vld [vmem:[%s3448_s2] sm:$0xff] (!%p364_p2)  ;;  %vm471_vm3 = vcmask (!%p364_p2), 31744   ;;  %vm790_vm4 = vcmask (!%p364_p2), 1039360   ;;  %v2789_v27 = vld [vmem:[%s3448_s2 + $0x8] sm:$0xff] (!%p364_p2) }
   0x8   : > { %v2802_v33 = vld [vmem:[%s3448_s2 + $0x10] sm:$0xff] (!%p364_p2)  ;;  %v969_v35 = vshrl.u32 (!%p364_p2), %v968_v34, 7  ;;  %v417_v37 = vld [vmem:[%s3446_s0] sm:$0xf] (!%p364_p2)  ;;  %s2926_s19 = smov (!%p364_p2), 2   ;;  %s2927_s20 = smov (!%p364_p2), 126  }
   0x9   : > { %v1002_v13 = vld [vmem:[%s3450_s4] sm:$0xff] (!%p364_p2) }
   0xa   : > { %v970_v36 = vsub.s32 (!%p364_p2), 0, %v969_v35  ;;  %v974_v38 = vsub.s32 (!%p364_p2), 1, %v969_v35  ;;  %v978_v40 = vsub.s32 (!%p364_p2), 2, %v969_v35  ;;  %v982_v44 = vsub.s32 (!%p364_p2), 3, %v969_v35 }
   0xc   : > { %v3090_v39 = vrot.slane (!%p364_p2), %v417_v37, %v970_v36  ;;  %v3092_v42 = vrot.slane (!%p364_p2), %v417_v37, %v974_v38  ;;  %v3096_v43 = vrot.slane (!%p364_p2), %v417_v37, %v978_v40  ;;  %v3106_v51 = vrot.slane (!%p364_p2), %v417_v37, %v982_v44 }
   0xd   : > { %s3494_s23 = smov (!%p406_p3, %s2782_s23), 7 }
   0xe   : > { %s2783_s24 = sshll.u32 %s3494_s23, 2  ;;  %vm984_vm5 = vcmp.ge.s32.totalorder %v3090_v39, 7  ;;  %vm988_vm6 = vcmp.lt.s32.totalorder %v3090_v39, 25  ;;  %vm985_vm8 = vcmp.ge.s32.totalorder %v3092_v42, 7  ;;  %vm989_vm9 = vcmp.lt.s32.totalorder %v3092_v42, 25  ;;  %s2785_s22 = sshll.u32 %s3494_s23, 3 }
   0xf   : > { %s409_s27 = scalar_lea.vmem %s3447_s1, %s2783_s24  ;;  %vm3098_vm7 = vmand %vm984_vm5, %vm988_vm6  ;;  %vm986_vm10 = vcmp.ge.s32.totalorder %v3096_v43, 7  ;;  %vm990_vm11 = vcmp.lt.s32.totalorder %v3096_v43, 25  ;;  %vm987_vm14 = vcmp.ge.s32.totalorder %v3106_v51, 7  ;;  %vm991_vm15 = vcmp.lt.s32.totalorder %v3106_v51, 25  ;;  %s415_s26 = scalar_lea.vmem %s3458_s12, %s2785_s22 }
  0x10   : > { %v420_v1 = vld [vmem:[%s409_s27] sm:$0xf]  ;;  %v2787_v2 = vld [vmem:[%s409_s27 + $0x8] sm:$0xf]  ;;  %v2786_v3 = vld [vmem:[%s409_s27 + $0x4] sm:$0xf] }
  0x11   : > { %422 = vrot.lane.b32.xlu0 %v420_v1, %s2922_s28  ;;  %437 = vrot.lane.b32.xlu1 %v2787_v2, %s2922_s28  ;;  %v2788_v4 = vld [vmem:[%s409_s27 + $0xc] sm:$0xf]  ;;  %vm3110_vm12 = vmand %vm985_vm8, %vm989_vm9  ;;  %vm1023_vm6 = vcmask 64512   ;;  %vm1653_vm8 = vcmp.lt.s32.totalorder %v3096_v43, 24  ;;  %vm1650_vm9 = vcmp.ge.s32.totalorder %v3106_v51, 8 }
  0x12   : > { %vm3115_vm13 = vmand %vm986_vm10, %vm990_vm11 }
  0x13   : > { %vm2810_vm5 = vmneg %vm465_vm1 }
  0x15   : > { %430 = vrot.lane.b32.xlu0 %v2786_v3, %s2922_s28  ;;  %444 = vrot.lane.b32.xlu1 %v2788_v4, %s2922_s28  ;;  %v1481_v3 = vld [vmem:[%s3451_s5] sm:$0xff] }
  0x16   : > { %v1496_v4 = vld [vmem:[%s3453_s7] sm:$0xff] }
  0x83   : > { %v423_v5 = vpop.permute.xlu0 %422  ;;  %v438_v6 = vpop.permute.xlu1 %437 }
  0x84   : > { %426 = vst.msk [vmem:[#allocation2] sm:$0xf] %vm425_vm0, %v423_v5  ;;  %440 = vst.msk [vmem:[#allocation2 + $0x8] sm:$0xf] %vm425_vm0, %v438_v6 }
  0x87   : > { %v431_v7 = vpop.permute.xlu0 %430  ;;  %v445_v8 = vpop.permute.xlu1 %444 }
  0x88   : > { %433 = vst.msk [vmem:[#allocation2 + $0x4] sm:$0xf] %vm425_vm0, %v431_v7  ;;  %447 = vst.msk [vmem:[#allocation2 + $0xc] sm:$0xf] %vm425_vm0, %v445_v8 }
  0x89   : > { %vm3127_vm0 = vmand %vm987_vm14, %vm991_vm15  ;;  %vm1675_vm14 = vcmp.lt.s32.totalorder %v3090_v39, 26  ;;  %vm1672_vm15 = vcmp.ge.s32.totalorder %v3092_v42, 6 }
  0x8f   : > { %v3011_v9 = vld [vmem:[#allocation2] sm:$0xff]  ;;  %v3013_v10 = vld [vmem:[#allocation2 + $0x8] sm:$0xff] }
  0x90   : > { %457 = vrot.lane.b32.xlu0 %v3011_v9, %s2923_s29  ;;  %v3019_v11 = vcombine.high %v3011_v9, %v3011_v9  ;;  %v3025_v12 = vcombine.high %v3013_v10, %v3013_v10 }
  0x92   : > { %459 = vrot.lane.b32.xlu1 %v3019_v11, %s2923_s29 }
  0x94   : > { %461 = vrot.lane.b32.xlu0 %v3013_v10, %s2923_s29 }
  0x96   : > { %463 = vrot.lane.b32.xlu1 %v3025_v12, %s2923_s29 }
  0x98   : > { %784 = vrot.lane.b32.xlu0 %v3019_v11, %s2924_s30 }
  0x9a   : > { %786 = vrot.lane.b32.xlu1 %v3013_v10, %s2924_s30 }
  0x9c   : > { %782 = vrot.lane.b32.xlu0 %v3011_v9, %s2924_s30 }
  0x9e   : > { %788 = vrot.lane.b32.xlu1 %v3025_v12, %s2924_s30 }
  0xa0   : > { %957 = vperm.xlu0 %2909, %v954_v14  }
 0x102   : > { %v458_v15 = vpop.permute.xlu0 %457 }
 0x103   : > { %v470_v20 = vsel %vm465_vm1, 0.0, %v458_v15 }
 0x104   : > { %v460_v16 = vpop.permute.xlu1 %459 }
 0x105   : > { %v466_v17 = vsel %vm465_vm1, %v458_v15, %v460_v16 }
 0x106   : > { %v462_v19 = vpop.permute.xlu0 %461  ;;  %2790 = vmatprep.subr.msk.mxu0 %vm475_vm2, %v466_v17 }
 0x107   : > { %2791 = vmatpush1.msk.msra.mxu0 %vm475_vm2, %v470_v20  ;;  %v467_v24 = vsel %vm465_vm1, %v460_v16, %v462_v19 }
 0x108   : > { %2792 = vmatmul.mubr.msk.f32.vlgmr.msra.gmra.mrb[0].mxu0 %vm471_vm3, %v452_v18  ;;  %2796 = vmatprep.subr.msk.mxu0 %vm475_vm2, %v3019_v11  ;;  %v464_v21 = vpop.permute.xlu1 %463 }
 0x109   : > { %2797 = vmatpush1.msk.msra.mxu0 %vm475_vm2, %v3011_v9  ;;  %v468_v22 = vsel %vm465_vm1, %v462_v19, %v464_v21  ;;  %702 = vmatprep.mubr.f32.mxu0 %v2921_v0  ;;  %v2809_v21 = vld [vmem:[%s3450_s4 + $0x8] sm:$0xff] }
 0x10a   : > { %v785_v23 = vpop.permute.xlu0 %784  ;;  %2793 = vmatprep.subr.msk.mxu1 %vm475_vm2, %v468_v22 }
 0x10b   : > { %2794 = vmatpush1.msk.msra.mxu1 %vm475_vm2, %v467_v24 }
 0x10c   : > { %2795 = vmatmul.mubr.msk.f32.vlgmr.msra.gmra.mrb[0].mxu1 %vm471_vm3, %v452_v18  ;;  %2799 = vmatprep.subr.msk.mxu1 %vm475_vm2, %v3025_v12  ;;  %v787_v25 = vpop.permute.xlu1 %786 }
 0x10d   : > { %v792_v26 = vsel %vm790_vm4, %v785_v23, %v787_v25  ;;  %2800 = vmatpush1.msk.msra.mxu1 %vm475_vm2, %v3013_v10  ;;  %773 = vmatprep.mubr.f32.mxu1 %v2921_v0 }
 0x10e   : > { %v783_v28 = vpop.permute.xlu0 %782  ;;  %2803 = vmatprep.subr.msk.mxu0 %vm475_vm2, %v792_v26 }
 0x10f   : > { %v791_v29 = vsel %vm790_vm4, %v783_v28, %v785_v23 }
 0x110   : > { %2798 = vmatmul.mubr.msk.f32.vlgmr.msra.gmra.mrb[0].mxu0 %vm471_vm3, %v2789_v27  ;;  %v789_v30 = vpop.permute.xlu1 %788 }
 0x111   : > { %2804 = vmatpush1.msk.msra.mxu0 %vm475_vm2, %v791_v29  ;;  %v795_v31 = vsel %vm790_vm4, %v789_v30, 0.0  ;;  %872 = vmatprep.mubr.f32.mxu0 %v2921_v0  ;;  %v793_v32 = vsel %vm790_vm4, %v787_v25, %v789_v30  ;;  %v2820_v25 = vld [vmem:[%s3450_s4 + $0x10] sm:$0xff] }
 0x112   : > { %2806 = vmatprep.subr.msk.mxu1 %vm475_vm2, %v795_v31 }
 0x114   : > { %2801 = vmatmul.mubr.msk.f32.vlgmr.msra.gmra.mrb[0].mxu1 %vm471_vm3, %v2789_v27 }
 0x115   : > { %2807 = vmatpush1.msk.msra.mxu1 %vm475_vm2, %v793_v32  ;;  %943 = vmatprep.mubr.f32.mxu1 %v2921_v0 }
 0x118   : > { %2805 = vmatmul.mubr.msk.f32.vlgmr.msra.gmra.mrb[0].mxu0 %vm471_vm3, %v2802_v33 }
 0x119   : > { %1091 = vmatprep.mubr.f32.mxu0 %v2921_v0 }
 0x11c   : > { %2808 = vmatmul.mubr.msk.f32.vlgmr.msra.gmra.mrb[0].mxu1 %vm471_vm3, %v2802_v33 }
 0x11d   : > { %1162 = vmatprep.mubr.f32.mxu1 %v2921_v0 }
 0x11f   : > { %v958_v41 = vpop.permute.xlu0 %957 }
 0x1eb   : > { %v874_v45 = vpop.f32.mrb[0].mxu0 }
 0x1ec   : > { %v960_v46 = vadd.f32 %v958_v41, %v874_v45  ;;  %v876_v47 = vpop.f32.mrb[1].mxu0 }
 0x1ed   : > { %v961_v48 = vadd.f32 %v958_v41, %v876_v47 }
 0x1ee   : > { %v964_v50 = vmax.f32 %v960_v46, 0.0 }
 0x1ef   : > { %v945_v52 = vpop.f32.mrb[0].mxu1  ;;  %v965_v53 = vmax.f32 %v961_v48, 0.0 }
 0x1f0   : > { %v962_v54 = vadd.f32 %v958_v41, %v945_v52  ;;  %v947_v55 = vpop.f32.mrb[1].mxu1  ;;  %v996_v56 = vsel %vm3098_vm7, %v964_v50, 0.0 }
 0x1f1   : > { %v963_v58 = vadd.f32 %v958_v41, %v947_v55  ;;  %1007 = vrot.lane.b32.xlu1 %v996_v56, %s2923_s29  ;;  %v997_v62 = vsel %vm3110_vm12, %v965_v53, 0.0 }
 0x1f2   : > { %v966_v60 = vmax.f32 %v962_v54, 0.0  ;;  %v2679_v54 = vld [vmem:[%s3457_s11] sm:$0xff] }
 0x1f3   : > { %v967_v61 = vmax.f32 %v963_v58, 0.0  ;;  %v2201_v58 = vld [vmem:[%s3456_s10] sm:$0xff] }
 0x1f4   : > { %v998_v63 = vsel %vm3115_vm13, %v966_v60, 0.0 }
 0x1f5   : > { %1009 = vrot.lane.b32.xlu1 %v997_v62, %s2923_s29  ;;  %1011 = vrot.lane.b32.xlu0 %v998_v63, %s2923_s29  ;;  %v999_v2 = vsel %vm3127_vm0, %v967_v61, 0.0 }
 0x1f9   : > { %1318 = vrot.lane.b32.xlu0 %v997_v62, %s2924_s30  ;;  %1013 = vrot.lane.b32.xlu1 %v999_v2, %s2923_s29 }
 0x1fd   : > { %1316 = vrot.lane.b32.xlu0 %v996_v56, %s2924_s30  ;;  %1320 = vrot.lane.b32.xlu1 %v998_v63, %s2924_s30 }
 0x201   : > { %1484 = vperm.xlu0 %2909, %v1481_v3   ;;  %1322 = vrot.lane.b32.xlu1 %v999_v2, %s2924_s30 }
 0x205   : > { %1499 = vperm.xlu1 %2910, %v1496_v4  }
 0x263   : > { %v1008_v5 = vpop.permute.xlu1 %1007 }
 0x267   : > { %v1012_v6 = vpop.permute.xlu0 %1011  ;;  %v1010_v7 = vpop.permute.xlu1 %1009 }
 0x268   : > { %v1015_v8 = vsel %vm465_vm1, %v1008_v5, %v1010_v7  ;;  %v1016_v17 = vsel %vm465_vm1, %v1010_v7, %v1012_v6 }
 0x269   : > { %1027 = vmatprep.subr.mxu0 %v1015_v8 }
 0x26a   : > { %2811 = vmatpush1.msk.msra.mxu0 %vm2810_vm5, %v1008_v5  ;;  %vm1676_vm5 = vcmp.lt.s32.totalorder %v3092_v42, 26 }
 0x26b   : > { %v1319_v14 = vpop.permute.xlu0 %1318  ;;  %2812 = vmatmul.mubr.msk.f32.vlgmr.msra.gmra.mrb[2].mxu0 %vm1023_vm6, %v1002_v13  ;;  %2814 = vmatprep.subr.msk.mxu0 %vm3110_vm12, %v965_v53  ;;  %v1014_v15 = vpop.permute.xlu1 %1013  ;;  %vm1654_vm12 = vcmp.lt.s32.totalorder %v3106_v51, 24 }
 0x26c   : > { %2815 = vmatpush1.msk.msra.mxu0 %vm3098_vm7, %v964_v50  ;;  %v1017_v16 = vsel %vm465_vm1, %v1012_v6, %v1014_v15  ;;  %1236 = vmatprep.mubr.f32.mxu0 %v2921_v0  ;;  %vm1647_vm1 = vcmp.ge.s32.totalorder %v3090_v39, 8  ;;  %vm1648_vm7 = vcmp.ge.s32.totalorder %v3092_v42, 8 }
 0x26d   : > { %1098 = vmatprep.subr.mxu1 %v1017_v16 }
 0x26e   : > { %1099 = vmatpush1.msra.mxu1 %v1016_v17 }
 0x26f   : > { %2813 = vmatmul.mubr.msk.f32.vlgmr.msra.gmra.mrb[2].mxu1 %vm1023_vm6, %v1002_v13  ;;  %2817 = vmatprep.subr.msk.mxu1 %vm3127_vm0, %v967_v61  ;;  %v1321_v18 = vpop.permute.xlu1 %1320  ;;  %v1317_v19 = vpop.permute.xlu0 %1316 }
 0x270   : > { %2818 = vmatpush1.msk.msra.mxu1 %vm3115_vm13, %v966_v60  ;;  %v1325_v20 = vsel %vm790_vm4, %v1319_v14, %v1321_v18  ;;  %1307 = vmatprep.mubr.f32.mxu1 %v2921_v0  ;;  %v1324_v22 = vsel %vm790_vm4, %v1317_v19, %v1319_v14  ;;  %vm1671_vm13 = vcmp.ge.s32.totalorder %v3090_v39, 6  ;;  %v2169_v14 = vld [vmem:[%s3455_s9] sm:$0xff] }
 0x271   : > { %1335 = vmatprep.subr.mxu0 %v1325_v20  ;;  %v1689_v19 = vld [vmem:[%s3454_s8] sm:$0xff] }
 0x273   : > { %2816 = vmatmul.mubr.msk.f32.vlgmr.msra.gmra.mrb[2].mxu0 %vm1023_vm6, %v2809_v21  ;;  %v1323_v23 = vpop.permute.xlu1 %1322 }
 0x274   : > { %1336 = vmatpush1.msra.mxu0 %v1324_v22  ;;  %2822 = vmatprep.subr.msk.mxu1 %vm790_vm4, %v1323_v23  ;;  %v1326_v24 = vsel %vm790_vm4, %v1321_v18, %v1323_v23  ;;  %vm1651_vm4 = vcmp.lt.s32.totalorder %v3090_v39, 24 }
 0x275   : > { %2824 = vmatprep.subr.msk.mxu0 %vm475_vm2, %v3019_v11  ;;  %1399 = vmatprep.mubr.f32.mxu0 %v2921_v0  ;;  %v1495_v11 = vld [vmem:[%s3452_s6] sm:$0xff]  ;;  %vm3203_vm10 = vmand %vm1647_vm1, %vm1651_vm4 }
 0x276   : > { %vm3230_vm1 = vmand %vm1650_vm9, %vm1654_vm12  ;;  %vm1678_vm9 = vcmp.lt.s32.totalorder %v3106_v51, 26  ;;  %vm1702_vm12 = vcmask 15360  }
 0x277   : > { %2819 = vmatmul.mubr.msk.f32.vlgmr.msra.gmra.mrb[2].mxu1 %vm1023_vm6, %v2809_v21  ;;  %vm3238_vm4 = vmand %vm1671_vm13, %vm1675_vm14  ;;  %vm2011_vm14 = vcmask 1031168  }
 0x278   : > { %1407 = vmatpush1.msra.mxu1 %v1326_v24  ;;  %1470 = vmatprep.mubr.f32.mxu1 %v2921_v0  ;;  %vm3306_vm13 = vmneg %vm1702_vm12 }
 0x279   : > { %2827 = vmatprep.subr.msk.mxu1 %vm475_vm2, %v3025_v12 }
 0x27b   : > { %2821 = vmatmul.mubr.msk.f32.vlgmr.msra.gmra.mrb[2].mxu0 %vm1023_vm6, %v2820_v25 }
 0x27c   : > { %2825 = vmatpush1.msk.msra.mxu0 %vm475_vm2, %v3011_v9  ;;  %1569 = vmatprep.mubr.f32.mxu0 %v2921_v0 }
 0x27f   : > { %2823 = vmatmul.mubr.msk.f32.vlgmr.msra.gmra.mrb[2].mxu1 %vm1023_vm6, %v2820_v25  ;;  %2826 = vmatmul.mubr.msk.f32.vlgmr.msra.gmra.mrb[4].mxu0 %vm471_vm3, %v1495_v11 }
 0x280   : > { %2828 = vmatpush1.msk.msra.mxu1 %vm475_vm2, %v3013_v10  ;;  %1640 = vmatprep.mubr.f32.mxu1 %v2921_v0  ;;  %v1485_v12 = vpop.permute.xlu0 %1484  ;;  %vm1652_vm2 = vcmp.lt.s32.totalorder %v3092_v42, 24 }
 0x281   : > { %1778 = vmatprep.mubr.f32.mxu0 %v2921_v0  ;;  %vm3207_vm11 = vmand %vm1648_vm7, %vm1652_vm2  ;;  %vm1673_vm7 = vcmp.ge.s32.totalorder %v3096_v43, 6  ;;  %vm1677_vm2 = vcmp.lt.s32.totalorder %v3096_v43, 26 }
 0x283   : > { %2829 = vmatmul.mubr.msk.f32.vlgmr.msra.gmra.mrb[4].mxu1 %vm471_vm3, %v1495_v11  ;;  %vm1649_vm3 = vcmp.ge.s32.totalorder %v3096_v43, 8 }
 0x284   : > { %1849 = vmatprep.mubr.f32.mxu1 %v2921_v0  ;;  %v1500_v28 = vpop.permute.xlu1 %1499  ;;  %vm3219_vm0 = vmand %vm1649_vm3, %vm1653_vm8  ;;  %vm1674_vm8 = vcmp.ge.s32.totalorder %v3106_v51, 6 }
 0x285   : > { %vm3246_vm3 = vmand %vm1672_vm15, %vm1676_vm5  ;;  %vm2183_vm15 = vcmp.ge.s32.totalorder %v3090_v39, 4  ;;  %vm2184_vm5 = vcmp.ge.s32.totalorder %v3092_v42, 4 }
 0x34e   : > { %v1401_v9 = vpop.f32.mrb[2].mxu0 }
 0x34f   : > { %v1403_v26 = vpop.f32.mrb[3].mxu0  ;;  %v1487_v27 = vadd.f32 %v1485_v12, %v1401_v9  ;;  %v2830_v9 = vld [vmem:[%s3454_s8 + $0x8] sm:$0xff] }
 0x350   : > { %v1488_v10 = vadd.f32 %v1485_v12, %v1403_v26 }
 0x351   : > { %v1491_v36 = vmax.f32 %v1487_v27, 0.0 }
 0x352   : > { %v1472_v29 = vpop.f32.mrb[2].mxu1  ;;  %v1571_v30 = vpop.f32.mrb[4].mxu0  ;;  %v1492_v40 = vmax.f32 %v1488_v10, 0.0  ;;  %v2841_v10 = vld [vmem:[%s3454_s8 + $0x10] sm:$0xff] }
 0x353   : > { %v1572_v32 = vadd.f32 %v1571_v30, %v1500_v28  ;;  %v1474_v33 = vpop.f32.mrb[3].mxu1  ;;  %v1573_v34 = vpop.f32.mrb[5].mxu0  ;;  %v1489_v37 = vadd.f32 %v1485_v12, %v1472_v29 }
 0x354   : > { %v1574_v38 = vadd.f32 %v1573_v34, %v1500_v28  ;;  %v1490_v41 = vadd.f32 %v1485_v12, %v1474_v33 }
 0x355   : > { %v1659_v45 = vsel %vm3203_vm10, %v1572_v32, 0.0  ;;  %v1493_v55 = vmax.f32 %v1489_v37, 0.0  ;;  %vm3270_vm10 = vmand %vm1673_vm7, %vm1677_vm2  ;;  %vm2185_vm2 = vcmp.ge.s32.totalorder %v3096_v43, 4 }
 0x356   : > { %v1660_v46 = vsel %vm3207_vm11, %v1574_v38, 0.0  ;;  %v1642_v47 = vpop.f32.mrb[4].mxu1  ;;  %v1663_v49 = vadd.f32 %v1659_v45, %v1491_v36  ;;  %v1494_v59 = vmax.f32 %v1490_v41, 0.0  ;;  %vm3278_vm11 = vmand %vm1674_vm8, %vm1678_vm9  ;;  %vm2186_vm8 = vcmp.ge.s32.totalorder %v3106_v51, 4 }
 0x357   : > { %v1664_v50 = vadd.f32 %v1660_v46, %v1492_v40  ;;  %v1643_v52 = vadd.f32 %v1642_v47, %v1500_v28  ;;  %v1644_v53 = vpop.f32.mrb[5].mxu1  ;;  %vm2190_vm9 = vcmp.lt.s32.totalorder %v3106_v51, 28 }
 0x358   : > { %v1645_v56 = vadd.f32 %v1644_v53, %v1500_v28  ;;  %v1667_v57 = vmax.f32 %v1663_v49, 0.0 }
 0x359   : > { %v1661_v60 = vsel %vm3219_vm0, %v1643_v52, 0.0  ;;  %v1668_v61 = vmax.f32 %v1664_v50, 0.0  ;;  %vm2187_vm0 = vcmp.lt.s32.totalorder %v3090_v39, 28 }
 0x35a   : > { %v1665_v62 = vadd.f32 %v1661_v60, %v1493_v55  ;;  %v1662_v63 = vsel %vm3230_vm1, %v1645_v56, 0.0  ;;  %v3258_v1 = vsel %vm3238_vm4, %v1667_v57, 0.0  ;;  %vm2188_vm1 = vcmp.lt.s32.totalorder %v3092_v42, 28 }
 0x35b   : > { %v1666_v2 = vadd.f32 %v1662_v63, %v1494_v59  ;;  %1694 = vrot.lane.b32.xlu0 %v3258_v1, %s2926_s19  ;;  %v3264_v3 = vsel %vm3246_vm3, %v1668_v61, 0.0  ;;  %vm3356_vm7 = vmand %vm2184_vm5, %vm2188_vm1  ;;  %vm2703_vm5 = vcmp.ge.s32.totalorder %v3096_v43, 2  ;;  %vm2707_vm1 = vcmp.lt.s32.totalorder %v3096_v43, 30 }
 0x35c   : > { %1696 = vrot.lane.b32.xlu1 %v3264_v3, %s2926_s19  ;;  %v1669_v5 = vmax.f32 %v1665_v62, 0.0 }
 0x35d   : > { %v1670_v7 = vmax.f32 %v1666_v2, 0.0 }
 0x35e   : > { %v3284_v8 = vsel %vm3270_vm10, %v1669_v5, 0.0 }
 0x35f   : > { %1698 = vrot.lane.b32.xlu0 %v3284_v8, %s2926_s19  ;;  %v3290_v13 = vsel %vm3278_vm11, %v1670_v7, 0.0 }
 0x360   : > { %1700 = vrot.lane.b32.xlu1 %v3290_v13, %s2926_s19 }
 0x363   : > { %2005 = vrot.lane.b32.xlu0 %v3264_v3, %s2927_s20 }
 0x364   : > { %2007 = vrot.lane.b32.xlu1 %v3284_v8, %s2927_s20 }
 0x367   : > { %2003 = vrot.lane.b32.xlu0 %v3258_v1, %s2927_s20 }
 0x368   : > { %2009 = vrot.lane.b32.xlu1 %v3290_v13, %s2927_s20 }
 0x36b   : > { %2172 = vperm.xlu0 %2909, %v2169_v14  }
 0x3cd   : > { %v1695_v15 = vpop.permute.xlu0 %1694 }
 0x3ce   : > { %v1697_v16 = vpop.permute.xlu1 %1696 }
 0x3cf   : > { %v1703_v18 = vsel %vm1702_vm12, %v1695_v15, %v1697_v16 }
 0x3d0   : > { %1714 = vmatprep.subr.mxu0 %v1703_v18 }
 0x3d1   : > { %2832 = vmatpush1.msk.msra.mxu0 %vm3306_vm13, %v1695_v15  ;;  %v1699_v20 = vpop.permute.xlu0 %1698 }
 0x3d2   : > { %v1701_v21 = vpop.permute.xlu1 %1700  ;;  %2833 = vmatmul.mubr.msk.f32.vlgmr.msra.gmra.mrb[6].mxu0 %vm1023_vm6, %v1689_v19  ;;  %2835 = vmatprep.subr.msk.mxu0 %vm3246_vm3, %v1668_v61  ;;  %v1704_v23 = vsel %vm1702_vm12, %v1697_v16, %v1699_v20  ;;  %vm2189_vm3 = vcmp.lt.s32.totalorder %v3096_v43, 28  ;;  %v2856_v16 = vld [vmem:[%s3456_s10 + $0x10] sm:$0xff] }
 0x3d3   : > { %2836 = vmatpush1.msk.msra.mxu0 %vm3238_vm4, %v1667_v57  ;;  %v1705_v22 = vsel %vm1702_vm12, %v1699_v20, %v1701_v21  ;;  %1923 = vmatprep.mubr.f32.mxu0 %v2921_v0  ;;  %vm3352_vm4 = vmand %vm2183_vm15, %vm2187_vm0  ;;  %vm2706_vm15 = vcmp.lt.s32.totalorder %v3092_v42, 30 }
 0x3d4   : > { %1785 = vmatprep.subr.mxu1 %v1705_v22 }
 0x3d5   : > { %1786 = vmatpush1.msra.mxu1 %v1704_v23  ;;  %v2006_v24 = vpop.permute.xlu0 %2005 }
 0x3d6   : > { %v2008_v25 = vpop.permute.xlu1 %2007  ;;  %2834 = vmatmul.mubr.msk.f32.vlgmr.msra.gmra.mrb[6].mxu1 %vm1023_vm6, %v1689_v19  ;;  %2838 = vmatprep.subr.msk.mxu1 %vm3278_vm11, %v1670_v7  ;;  %vm3374_vm11 = vmand %vm2186_vm8, %vm2190_vm9 }
 0x3d7   : > { %2839 = vmatpush1.msk.msra.mxu1 %vm3270_vm10, %v1669_v5  ;;  %v2013_v11 = vsel %vm2011_vm14, %v2006_v24, %v2008_v25  ;;  %1994 = vmatprep.mubr.f32.mxu1 %v2921_v0  ;;  %vm3369_vm10 = vmand %vm2185_vm2, %vm2189_vm3  ;;  %v2845_v5 = vld [vmem:[%s3456_s10 + $0x8] sm:$0xff] }
 0x3d8   : > { %2023 = vmatprep.subr.mxu0 %v2013_v11  ;;  %vm2711_vm2 = vmand %vm2703_vm5, %vm2707_vm1 }
 0x3d9   : > { %v2004_v12 = vpop.permute.xlu0 %2003 }
 0x3da   : > { %v2012_v26 = vsel %vm2011_vm14, %v2004_v12, %v2006_v24  ;;  %v2010_v27 = vpop.permute.xlu1 %2009  ;;  %2837 = vmatmul.mubr.msk.f32.vlgmr.msra.gmra.mrb[6].mxu0 %vm1023_vm6, %v2830_v9 }
 0x3db   : > { %2024 = vmatpush1.msra.mxu0 %v2012_v26  ;;  %2843 = vmatprep.subr.msk.mxu1 %vm2011_vm14, %v2010_v27  ;;  %v2014_v28 = vsel %vm2011_vm14, %v2008_v25, %v2010_v27 }
 0x3dc   : > { %2087 = vmatprep.mubr.f32.mxu0 %v2921_v0 }
 0x3de   : > { %2840 = vmatmul.mubr.msk.f32.vlgmr.msra.gmra.mrb[6].mxu1 %vm1023_vm6, %v2830_v9 }
 0x3df   : > { %2095 = vmatpush1.msra.mxu1 %v2014_v28  ;;  %2158 = vmatprep.mubr.f32.mxu1 %v2921_v0 }
 0x3e2   : > { %2842 = vmatmul.mubr.msk.f32.vlgmr.msra.gmra.mrb[6].mxu0 %vm1023_vm6, %v2841_v10 }
 0x3e3   : > { %2289 = vmatprep.mubr.f32.mxu0 %v2921_v0 }
 0x3e6   : > { %2844 = vmatmul.mubr.msk.f32.vlgmr.msra.gmra.mrb[6].mxu1 %vm1023_vm6, %v2841_v10 }
 0x3e7   : > { %2360 = vmatprep.mubr.f32.mxu1 %v2921_v0 }
 0x3ea   : > { %v2173_v29 = vpop.permute.xlu0 %2172 }
 0x4b5   : > { %v2089_v30 = vpop.f32.mrb[6].mxu0 }
 0x4b6   : > { %v2175_v31 = vadd.f32 %v2173_v29, %v2089_v30  ;;  %v2091_v32 = vpop.f32.mrb[7].mxu0 }
 0x4b7   : > { %v2176_v33 = vadd.f32 %v2173_v29, %v2091_v32 }
 0x4b8   : > { %v2179_v35 = vmax.f32 %v2175_v31, 0.0 }
 0x4b9   : > { %v2180_v37 = vmax.f32 %v2176_v33, 0.0  ;;  %v2160_v38 = vpop.f32.mrb[6].mxu1 }
 0x4ba   : > { %v2177_v40 = vadd.f32 %v2173_v29, %v2160_v38  ;;  %v2162_v41 = vpop.f32.mrb[7].mxu1  ;;  %v2195_v44 = vsel %vm3352_vm4, %v2179_v35, 0.0 }
 0x4bb   : > { %v2178_v45 = vadd.f32 %v2173_v29, %v2162_v41  ;;  %2206 = vrot.lane.b32.xlu1 %v2195_v44, %s2926_s19  ;;  %v2196_v46 = vsel %vm3356_vm7, %v2180_v37, 0.0 }
 0x4bc   : > { %v2181_v48 = vmax.f32 %v2177_v40, 0.0  ;;  %2208 = vrot.lane.b32.xlu0 %v2196_v46, %s2926_s19 }
 0x4bd   : > { %v2182_v50 = vmax.f32 %v2178_v45, 0.0 }
 0x4be   : > { %v2197_v52 = vsel %vm3369_vm10, %v2181_v48, 0.0 }
 0x4bf   : > { %2210 = vrot.lane.b32.xlu1 %v2197_v52, %s2926_s19  ;;  %v2198_v53 = vsel %vm3374_vm11, %v2182_v50, 0.0 }
 0x4c0   : > { %2212 = vrot.lane.b32.xlu0 %v2198_v53, %s2926_s19 }
 0x4c3   : > { %2516 = vrot.lane.b32.xlu1 %v2196_v46, %s2927_s20 }
 0x4c4   : > { %2518 = vrot.lane.b32.xlu0 %v2197_v52, %s2927_s20 }
 0x4c7   : > { %2514 = vrot.lane.b32.xlu1 %v2195_v44, %s2927_s20 }
 0x4c8   : > { %2520 = vrot.lane.b32.xlu0 %v2198_v53, %s2927_s20 }
 0x4cb   : > { %2682 = vperm.xlu1 %2910, %v2679_v54  }
 0x52d   : > { %v2207_v55 = vpop.permute.xlu1 %2206 }
 0x52e   : > { %v2209_v56 = vpop.permute.xlu0 %2208 }
 0x52f   : > { %v2214_v57 = vsel %vm1702_vm12, %v2207_v55, %v2209_v56 }
 0x530   : > { %2225 = vmatprep.subr.mxu0 %v2214_v57 }
 0x531   : > { %2847 = vmatpush1.msk.msra.mxu0 %vm3306_vm13, %v2207_v55  ;;  %v2211_v59 = vpop.permute.xlu1 %2210  ;;  %vm2705_vm13 = vcmp.lt.s32.totalorder %v3090_v39, 30 }
 0x532   : > { %v2213_v60 = vpop.permute.xlu0 %2212  ;;  %2848 = vmatmul.mubr.msk.f32.vlgmr.msra.gmra.mrb[8].mxu0 %vm1023_vm6, %v2201_v58  ;;  %2850 = vmatprep.subr.msk.mxu0 %vm3356_vm7, %v2180_v37  ;;  %v2215_v62 = vsel %vm1702_vm12, %v2209_v56, %v2211_v59  ;;  %vm2708_vm7 = vcmp.lt.s32.totalorder %v3106_v51, 30 }
 0x533   : > { %2851 = vmatpush1.msk.msra.mxu0 %vm3352_vm4, %v2179_v35  ;;  %v2216_v61 = vsel %vm1702_vm12, %v2211_v59, %v2213_v60  ;;  %2434 = vmatprep.mubr.f32.mxu0 %v2921_v0  ;;  %vm2701_vm12 = vcmp.ge.s32.totalorder %v3090_v39, 2  ;;  %vm2704_vm4 = vcmp.ge.s32.totalorder %v3106_v51, 2 }
 0x534   : > { %2296 = vmatprep.subr.mxu1 %v2216_v61  ;;  %vm2712_vm3 = vmand %vm2704_vm4, %vm2708_vm7 }
 0x535   : > { %2297 = vmatpush1.msra.mxu1 %v2215_v62  ;;  %v2517_v63 = vpop.permute.xlu1 %2516 }
 0x536   : > { %v2519_v2 = vpop.permute.xlu0 %2518  ;;  %2849 = vmatmul.mubr.msk.f32.vlgmr.msra.gmra.mrb[8].mxu1 %vm1023_vm6, %v2201_v58  ;;  %2853 = vmatprep.subr.msk.mxu1 %vm3374_vm11, %v2182_v50 }
 0x537   : > { %2854 = vmatpush1.msk.msra.mxu1 %vm3369_vm10, %v2181_v48  ;;  %v2523_v4 = vsel %vm2011_vm14, %v2517_v63, %v2519_v2  ;;  %2505 = vmatprep.mubr.f32.mxu1 %v2921_v0 }
 0x538   : > { %2533 = vmatprep.subr.mxu0 %v2523_v4 }
 0x539   : > { %v2515_v6 = vpop.permute.xlu1 %2514 }
 0x53a   : > { %v2522_v7 = vsel %vm2011_vm14, %v2515_v6, %v2517_v63  ;;  %v2521_v14 = vpop.permute.xlu0 %2520  ;;  %2852 = vmatmul.mubr.msk.f32.vlgmr.msra.gmra.mrb[8].mxu0 %vm1023_vm6, %v2845_v5 }
 0x53b   : > { %2534 = vmatpush1.msra.mxu0 %v2522_v7  ;;  %2858 = vmatprep.subr.msk.mxu1 %vm2011_vm14, %v2521_v14  ;;  %v2524_v15 = vsel %vm2011_vm14, %v2519_v2, %v2521_v14  ;;  %vm2702_vm14 = vcmp.ge.s32.totalorder %v3092_v42, 2 }
 0x53c   : > { %2597 = vmatprep.mubr.f32.mxu0 %v2921_v0  ;;  %vm2710_vm0 = vmand %vm2702_vm14, %vm2706_vm15 }
 0x53e   : > { %2855 = vmatmul.mubr.msk.f32.vlgmr.msra.gmra.mrb[8].mxu1 %vm1023_vm6, %v2845_v5 }
 0x53f   : > { %2605 = vmatpush1.msra.mxu1 %v2524_v15  ;;  %2668 = vmatprep.mubr.f32.mxu1 %v2921_v0 }
 0x542   : > { %2857 = vmatmul.mubr.msk.f32.vlgmr.msra.gmra.mrb[8].mxu0 %vm1023_vm6, %v2856_v16 }
 0x546   : > { %2859 = vmatmul.mubr.msk.f32.vlgmr.msra.gmra.mrb[8].mxu1 %vm1023_vm6, %v2856_v16  ;;  %vm2709_vm6 = vmand %vm2701_vm12, %vm2705_vm13 }
 0x54a   : > { %v2683_v17 = vpop.permute.xlu1 %2682 }
 0x615   : > { %v2599_v18 = vpop.f32.mrb[8].mxu0 }
 0x616   : > { %v2685_v19 = vadd.f32 %v2683_v17, %v2599_v18  ;;  %v2601_v20 = vpop.f32.mrb[9].mxu0 }
 0x617   : > { %v2686_v21 = vadd.f32 %v2683_v17, %v2601_v20 }
 0x618   : > { %v2689_v22 = vmax.f32 %v2685_v19, 0.0 }
 0x619   : > { %v2690_v23 = vmax.f32 %v2686_v21, 0.0  ;;  %v2670_v0 = vpop.f32.mrb[8].mxu1 }
 0x61a   : > { %v2693_v24 = vadd.f32 %v2689_v22, %v3258_v1  ;;  %v2687_v25 = vadd.f32 %v2683_v17, %v2670_v0  ;;  %v2672_v11 = vpop.f32.mrb[9].mxu1 }
 0x61b   : > { %v2694_v9 = vadd.f32 %v2690_v23, %v3264_v3  ;;  %v2688_v12 = vadd.f32 %v2683_v17, %v2672_v11 }
 0x61c   : > { %v2697_v39 = vmax.f32 %v2693_v24, 0.0  ;;  %v2691_v26 = vmax.f32 %v2687_v25, 0.0 }
 0x61d   : > { %v2698_v42 = vmax.f32 %v2694_v9, 0.0  ;;  %v2692_v27 = vmax.f32 %v2688_v12, 0.0 }
 0x61e   : > { %v2713_v1 = vsel %vm2709_vm6, %v2697_v39, 0.0  ;;  %v2695_v3 = vadd.f32 %v2691_v26, %v3284_v8 }
 0x61f   : > { %2717 = vst [vmem:[%s415_s26] sm:$0xff] %v2713_v1  ;;  %v2714_v28 = vsel %vm2710_vm0, %v2698_v42, 0.0  ;;  %v2696_v10 = vadd.f32 %v2692_v27, %v3290_v13 }
 0x620   : > { %2718 = vst [vmem:[%s415_s26 + $0x8] sm:$0xff] %v2714_v28  ;;  %v2699_v29 = vmax.f32 %v2695_v3, 0.0 }
 0x621   : > { %v2700_v30 = vmax.f32 %v2696_v10, 0.0 }
 0x622   : > { %v2715_v31 = vsel %vm2711_vm2, %v2699_v29, 0.0 }
 0x623   : > { %2719 = vst [vmem:[%s415_s26 + $0x10] sm:$0xff] %v2715_v31  ;;  %v2716_v43 = vsel %vm2712_vm3, %v2700_v30, 0.0 }
 0x624   : > { %2720 = vst [vmem:[%s415_s26 + $0x18] sm:$0xff] %v2716_v43 }
 0x625 PF: > { %s22_s21 = sadd.s32 1, %s2919_s21  }
 0x626   : > { %p19_p4 = scmp.ge.s32.totalorder %s22_s21, 4  }
 0x628   :  { %21 = sbr.rel (!%p19_p4) target bundleno = 1 (0x1), region = 109 }

</bundles_post_ra>
